<compile_context>
chip_gen: v7x
topology: tpu7x:2x2x1
jax: 0.10.0
libtpu: 0.0.40
codegen_flags: <defaults>
</compile_context>

<pallas_src>
import functools

import jax
import jax.numpy as jnp
from jax.experimental import pallas as pl
from jax.experimental.pallas import tpu as pltpu


def conv_block_kernel(x_ref, g_ref, w_ref, b_ref, o_ref, *,
                      eps, true_dim, seq_len, seqs_per_tile,
                      kernel_size, dilation, padding):
    x = x_ref[...]                                    # (TM, Dp) f32, TM = seqs_per_tile * seq_len
    TM, Dp = x.shape

    # --- RMSNorm over the *true* hidden dim (padded lanes are zero) ---
    ss = jnp.sum(x * x, axis=-1, keepdims=True) * (1.0 / true_dim)
    normed = x * jax.lax.rsqrt(ss + eps) * g_ref[...]          # f32
    normed_mx = normed.astype(w_ref.dtype)                     # bf16 for the MXU

    # --- one zero-padded slab, built once; each tap is a static slice of it ---
    bottom = max(0, dilation * (kernel_size - 1) - padding)
    pieces = []
    if padding > 0:
        pieces.append(jnp.zeros((padding, Dp), normed_mx.dtype))
    pieces.append(normed_mx)
    if bottom > 0:
        pieces.append(jnp.zeros((bottom, Dp), normed_mx.dtype))
    slab = jnp.concatenate(pieces, axis=0) if len(pieces) > 1 else normed_mx

    # Within-sequence position (only needed when a tile folds >1 sequence):
    # used to zero taps that would otherwise leak across sequence boundaries.
    if seqs_per_tile > 1:
        t_in_seq = jax.lax.broadcasted_iota(jnp.int32, (TM, 1), 0) % seq_len

    # --- dilated causal conv as K (TM, Dp) @ (Dp, Dp) MXU matmuls ---
    # acc initialized from the bias (saves a zeros tensor + a full-tile add).
    acc = jnp.broadcast_to(b_ref[...], (TM, Dp)).astype(jnp.float32)
    for k in range(kernel_size):
        shift = padding - k * dilation                 # static python int
        start = k * dilation
        tap = slab[start:start + TM]                   # = normed[t - shift] (0 before tile start)
        if seqs_per_tile > 1 and shift != 0:
            if shift > 0:
                valid = t_in_seq >= shift              # zero history at each sequence start
            else:
                valid = t_in_seq < (seq_len + shift)   # (non-causal tap) no peek past sequence end
            tap = jnp.where(valid, tap, jnp.zeros_like(tap))
        acc = acc + jnp.dot(tap, w_ref[k], preferred_element_type=jnp.float32)

    out = jnp.maximum(acc, 0.0) + x                    # ReLU + residual, f32
    o_ref[...] = out.astype(o_ref.dtype)


def _pick_seqs_per_tile(batch, seq_len, target_rows):
    """Whole sequences per row tile; divides batch and keeps the sublane dim % 8 == 0."""
    cand = min(batch, max(1, target_rows // seq_len))
    for spt in range(cand, 0, -1):
        if batch % spt == 0 and (spt * seq_len) % 8 == 0:
            return spt
    return batch   # fall back to the full array (block == full dim is always legal)


def conv_block(x, rms_weight, conv_weight, conv_bias, *,
               eps=1e-5, dilation=1, padding=2, target_rows=512):
    """x: [B, S, D]; conv_weight: [Cout, Cin, K] (PyTorch layout)."""
    B, S, D = x.shape
    K = conv_weight.shape[-1]
    Dp = ((D + 127) // 128) * 128                      # lane-dense channel dim

    # Wrapper-side layout plumbing: pad channels to Dp, fold batch into rows.
    xp = jnp.pad(x, ((0, 0), (0, 0), (0, Dp - D))).reshape(B * S, Dp)
    g = jnp.pad(rms_weight, (0, Dp - D)).reshape(1, Dp).astype(jnp.float32)
    b = jnp.pad(conv_bias, (0, Dp - D)).reshape(1, Dp).astype(jnp.float32)
    w = jnp.transpose(conv_weight, (2, 1, 0))          # [K, Cin, Cout]
    w = jnp.pad(w, ((0, 0), (0, Dp - D), (0, Dp - D))).astype(jnp.bfloat16)

    spt = _pick_seqs_per_tile(B, S, target_rows)
    TM = spt * S
    grid = (B // spt,)

    # VMEM budget: double-buffered in/out tiles + resident bf16 weights + headroom,
    # clipped so the request stays inside v7x's 64 MiB physical VMEM.
    est = 4 * TM * Dp * 4 + 2 * K * Dp * Dp * 2 + 4 * TM * Dp * 4 + 8 * Dp * 4
    vmem_limit = int(min(max(2 * est, 16 * 1024 * 1024), 48 * 1024 * 1024))

    kern = functools.partial(
        conv_block_kernel, eps=eps, true_dim=D, seq_len=S, seqs_per_tile=spt,
        kernel_size=K, dilation=dilation, padding=padding)

    out = pl.pallas_call(
        kern,
        out_shape=jax.ShapeDtypeStruct((B * S, Dp), x.dtype),
        grid_spec=pltpu.PrefetchScalarGridSpec(
            num_scalar_prefetch=0,
            grid=grid,
            in_specs=[
                pl.BlockSpec((TM, Dp), lambda i: (i, 0)),        # folded rows of x
                pl.BlockSpec((1, Dp), lambda i: (0, 0)),         # RMSNorm gain
                pl.BlockSpec((K, Dp, Dp), lambda i: (0, 0, 0)),  # conv weights (VMEM-resident)
                pl.BlockSpec((1, Dp), lambda i: (0, 0)),         # conv bias
            ],
            out_specs=pl.BlockSpec((TM, Dp), lambda i: (i, 0)),
        ),
        compiler_params=pltpu.CompilerParams(
            dimension_semantics=("parallel",),
            vmem_limit_bytes=vmem_limit),
    )(xp, g, w, b)

    return out[:, :D].reshape(B, S, D)


def reference(x, rms_weight, conv_weight, conv_bias, *, eps, dilation, padding):
    """Plain-JAX f32 reference mirroring the PyTorch forward."""
    B, S, D = x.shape
    K = conv_weight.shape[-1]
    ms = jnp.mean(x * x, axis=-1, keepdims=True)
    normed = x * jax.lax.rsqrt(ms + eps) * rms_weight
    out = jnp.broadcast_to(conv_bias, (B, S, D))
    for k in range(K):
        shift = padding - k * dilation
        shifted = jnp.pad(normed, ((0, 0), (max(shift, 0), max(-shift, 0)), (0, 0)))
        shifted = shifted[:, :S, :] if shift >= 0 else shifted[:, -S:, :]
        out = out + jnp.einsum('bsi,oi->bso', shifted, conv_weight[:, :, k])
    return jnp.maximum(out, 0.0) + x


if __name__ == "__main__":
    # ConvBlock(dim=32, norm_eps=1e-5, dilation=1, padding=2, kernel_size=3)
    # padding = dilation * (kernel_size - 1) => causal, output length == input length.
    B, S, D, K = 2, 16, 32, 3
    dilation, padding, eps = 1, 2, 1e-5

    key = jax.random.PRNGKey(0)
    kx, kw, kb, kg = jax.random.split(key, 4)
    x = jax.random.normal(kx, (B, S, D), dtype=jnp.float32)
    conv_weight = jax.random.normal(kw, (D, D, K), dtype=jnp.float32) * 0.1
    conv_bias = jax.random.normal(kb, (D,), dtype=jnp.float32) * 0.1
    rms_weight = 1.0 + 0.1 * jax.random.normal(kg, (D,), dtype=jnp.float32)

    out = conv_block(x, rms_weight, conv_weight, conv_bias,
                     eps=eps, dilation=dilation, padding=padding)
    out = jax.block_until_ready(out)

    ref = reference(x, rms_weight, conv_weight, conv_bias,
                    eps=eps, dilation=dilation, padding=padding)
    assert out.shape == (B, S, D)
    # bf16 MXU operands (f32 accumulation) => looser tolerance vs the f32 reference.
    assert jnp.allclose(out, ref, atol=2e-2, rtol=2e-2), "mismatch vs reference"

    print("KERNEL_OK")
</pallas_src>

<mosaic_0001>
module attributes {stable_mosaic.version = 11 : i64} {
  func.func @conv_block_kernel(%arg0: i32, %arg1: memref<32x128xf32, #tpu.memory_space<vmem>>, %arg2: memref<1x128xf32, #tpu.memory_space<vmem>>, %arg3: memref<3x128x128xbf16, #tpu.memory_space<vmem>>, %arg4: memref<1x128xf32, #tpu.memory_space<vmem>>, %arg5: memref<32x128xf32, #tpu.memory_space<vmem>>) attributes {dimension_semantics = [#tpu.dimension_semantics<parallel>], iteration_bounds = array<i64: 1>, scalar_prefetch = 0 : i64, scratch_operands = 0 : i64, tpu.core_type = #tpu.core_type<tc>, window_params = [{transform_indices = @transform_0, window_bounds = array<i64: 32, 128>}, {pipeline_mode = #tpu.pipeline_mode<synchronous>, transform_indices = @transform_1, window_bounds = array<i64: 1, 128>}, {pipeline_mode = #tpu.pipeline_mode<synchronous>, transform_indices = @transform_2, window_bounds = array<i64: 3, 128, 128>}, {pipeline_mode = #tpu.pipeline_mode<synchronous>, transform_indices = @transform_3, window_bounds = array<i64: 1, 128>}, {transform_indices = @transform_4, window_bounds = array<i64: 32, 128>}]} {
    %c0 = arith.constant 0 : index
    %c0_0 = arith.constant 0 : index
    %0 = vector.load %arg1[%c0, %c0_0] : memref<32x128xf32, #tpu.memory_space<vmem>>, vector<32x128xf32>
    %1 = arith.mulf %0, %0 : vector<32x128xf32>
    %cst = arith.constant dense<0.000000e+00> : vector<32xf32>
    %2 = vector.multi_reduction <add>, %1, %cst [1] : vector<32x128xf32> to vector<32xf32>
    %3 = vector.shape_cast %2 : vector<32xf32> to vector<32x1xf32>
    %cst_1 = arith.constant 3.125000e-02 : f32
    %4 = vector.broadcast %cst_1 : f32 to vector<32x1xf32>
    %5 = arith.mulf %3, %4 : vector<32x1xf32>
    %cst_2 = arith.constant 9.99999974E-6 : f32
    %6 = vector.broadcast %cst_2 : f32 to vector<32x1xf32>
    %7 = arith.addf %5, %6 : vector<32x1xf32>
    %8 = math.rsqrt %7 : vector<32x1xf32>
    %9 = vector.broadcast %8 : vector<32x1xf32> to vector<32x128xf32>
    %10 = arith.mulf %0, %9 : vector<32x128xf32>
    %c0_3 = arith.constant 0 : index
    %c0_4 = arith.constant 0 : index
    %11 = vector.load %arg2[%c0_3, %c0_4] : memref<1x128xf32, #tpu.memory_space<vmem>>, vector<1x128xf32>
    %12 = vector.broadcast %11 : vector<1x128xf32> to vector<32x128xf32>
    %13 = arith.mulf %10, %12 : vector<32x128xf32>
    %14 = arith.truncf %13 : vector<32x128xf32> to vector<32x128xbf16>
    %cst_5 = arith.constant 0.000000e+00 : bf16
    %15 = vector.broadcast %cst_5 : bf16 to vector<2x128xbf16>
    %16 = tpu.concatenate %15, %14 in 0 : vector<2x128xbf16>, vector<32x128xbf16> -> vector<34x128xbf16>
    %17 = tpu.iota {dimensions = array<i32: 0>} : vector<32x1xi32>
    %c16_i32 = arith.constant 16 : i32
    %c0_i32 = arith.constant 0 : i32
    %18 = arith.cmpi eq, %c16_i32, %c0_i32 : i32
    %c1_i32 = arith.constant 1 : i32
    %19 = arith.select %18, %c1_i32, %c16_i32 : i32
    %20 = vector.broadcast %19 : i32 to vector<32x1xi32>
    %21 = arith.remsi %17, %20 : vector<32x1xi32>
    %c0_i32_6 = arith.constant 0 : i32
    %22 = vector.broadcast %c0_i32_6 : i32 to vector<32x1xi32>
    %23 = arith.cmpi ne, %21, %22 : vector<32x1xi32>
    %c0_i32_7 = arith.constant 0 : i32
    %24 = vector.broadcast %c0_i32_7 : i32 to vector<32x1xi32>
    %25 = arith.cmpi slt, %21, %24 : vector<32x1xi32>
    %c0_i32_8 = arith.constant 0 : i32
    %26 = arith.cmpi slt, %19, %c0_i32_8 : i32
    %27 = vector.broadcast %26 : i1 to vector<32x1xi1>
    %28 = vector.broadcast %27 : vector<32x1xi1> to vector<32x1xi1>
    %29 = arith.xori %25, %28 : vector<32x1xi1>
    %30 = arith.andi %29, %23 : vector<32x1xi1>
    %31 = vector.broadcast %19 : i32 to vector<32x1xi32>
    %32 = arith.addi %21, %31 : vector<32x1xi32>
    %33 = arith.select %30, %32, %21 : vector<32x1xi1>, vector<32x1xi32>
    %c0_9 = arith.constant 0 : index
    %c0_10 = arith.constant 0 : index
    %34 = vector.load %arg4[%c0_9, %c0_10] : memref<1x128xf32, #tpu.memory_space<vmem>>, vector<1x128xf32>
    %35 = vector.shape_cast %34 : vector<1x128xf32> to vector<1x128xf32>
    %36 = vector.broadcast %35 : vector<1x128xf32> to vector<32x128xf32>
    %37 = vector.extract_strided_slice %16 {offsets = [0, 0], sizes = [32, 128], strides = [1, 1]} : vector<34x128xbf16> to vector<32x128xbf16>
    %c2_i32 = arith.constant 2 : i32
    %38 = vector.broadcast %c2_i32 : i32 to vector<32x1xi32>
    %39 = arith.cmpi sge, %33, %38 : vector<32x1xi32>
    %cst_11 = arith.constant 0.000000e+00 : bf16
    %40 = vector.broadcast %cst_11 : bf16 to vector<32x128xbf16>
    %41 = vector.shape_cast %39 : vector<32x1xi1> to vector<32x1xi1>
    %42 = vector.broadcast %41 : vector<32x1xi1> to vector<32x128xi1>
    %43 = arith.select %42, %37, %40 : vector<32x128xi1>, vector<32x128xbf16>
    %c0_12 = arith.constant 0 : index
    %c0_13 = arith.constant 0 : index
    %c0_14 = arith.constant 0 : index
    %44 = vector.load %arg3[%c0_12, %c0_13, %c0_14] : memref<3x128x128xbf16, #tpu.memory_space<vmem>>, vector<1x128x128xbf16>
    %45 = vector.shape_cast %44 : vector<1x128x128xbf16> to vector<128x128xbf16>
    %cst_15 = arith.constant dense<0.000000e+00> : vector<32x128xf32>
    %46 = tpu.matmul %43, %45, %cst_15 {dimension_numbers = #tpu.dot_dimension_numbers<[1], [0], [0], [1], [0, 0, 1, 1], [], []>} : vector<32x128xbf16>, vector<128x128xbf16>, vector<32x128xf32> -> vector<32x128xf32>
    %47 = arith.addf %36, %46 : vector<32x128xf32>
    %48 = vector.extract_strided_slice %16 {offsets = [1, 0], sizes = [32, 128], strides = [1, 1]} : vector<34x128xbf16> to vector<32x128xbf16>
    %c1_i32_16 = arith.constant 1 : i32
    %49 = vector.broadcast %c1_i32_16 : i32 to vector<32x1xi32>
    %50 = arith.cmpi sge, %33, %49 : vector<32x1xi32>
    %cst_17 = arith.constant 0.000000e+00 : bf16
    %51 = vector.broadcast %cst_17 : bf16 to vector<32x128xbf16>
    %52 = vector.shape_cast %50 : vector<32x1xi1> to vector<32x1xi1>
    %53 = vector.broadcast %52 : vector<32x1xi1> to vector<32x128xi1>
    %54 = arith.select %53, %48, %51 : vector<32x128xi1>, vector<32x128xbf16>
    %c1 = arith.constant 1 : index
    %c0_18 = arith.constant 0 : index
    %c0_19 = arith.constant 0 : index
    %55 = vector.load %arg3[%c1, %c0_18, %c0_19] : memref<3x128x128xbf16, #tpu.memory_space<vmem>>, vector<1x128x128xbf16>
    %56 = vector.shape_cast %55 : vector<1x128x128xbf16> to vector<128x128xbf16>
    %cst_20 = arith.constant dense<0.000000e+00> : vector<32x128xf32>
    %57 = tpu.matmul %54, %56, %cst_20 {dimension_numbers = #tpu.dot_dimension_numbers<[1], [0], [0], [1], [0, 0, 1, 1], [], []>} : vector<32x128xbf16>, vector<128x128xbf16>, vector<32x128xf32> -> vector<32x128xf32>
    %58 = arith.addf %47, %57 : vector<32x128xf32>
    %59 = vector.extract_strided_slice %16 {offsets = [2, 0], sizes = [32, 128], strides = [1, 1]} : vector<34x128xbf16> to vector<32x128xbf16>
    %c2 = arith.constant 2 : index
    %c0_21 = arith.constant 0 : index
    %c0_22 = arith.constant 0 : index
    %60 = vector.load %arg3[%c2, %c0_21, %c0_22] : memref<3x128x128xbf16, #tpu.memory_space<vmem>>, vector<1x128x128xbf16>
    %61 = vector.shape_cast %60 : vector<1x128x128xbf16> to vector<128x128xbf16>
    %cst_23 = arith.constant dense<0.000000e+00> : vector<32x128xf32>
    %62 = tpu.matmul %59, %61, %cst_23 {dimension_numbers = #tpu.dot_dimension_numbers<[1], [0], [0], [1], [0, 0, 1, 1], [], []>} : vector<32x128xbf16>, vector<128x128xbf16>, vector<32x128xf32> -> vector<32x128xf32>
    %63 = arith.addf %58, %62 : vector<32x128xf32>
    %cst_24 = arith.constant 0.000000e+00 : f32
    %64 = vector.broadcast %cst_24 : f32 to vector<32x128xf32>
    %65 = arith.maximumf %63, %64 : vector<32x128xf32>
    %66 = arith.addf %65, %0 : vector<32x128xf32>
    %c0_25 = arith.constant 0 : index
    %c0_26 = arith.constant 0 : index
    %67 = vector.load %arg5[%c0_25, %c0_26] : memref<32x128xf32, #tpu.memory_space<vmem>>, vector<32x128xf32>
    tpu.vector_store %arg5[%c0_25, %c0_26], %66 {strides = array<i32>} : memref<32x128xf32, #tpu.memory_space<vmem>>, vector<32x128xf32>,
    return
  }
  func.func @transform_0(%arg0: i32) -> (i32, i32) {
    %c0_i32 = arith.constant 0 : i32
    %c0_i32_0 = arith.constant 0 : i32
    return %arg0, %c0_i32 : i32, i32
  }
  func.func @transform_1(%arg0: i32) -> (i32, i32) {
    %c0_i32 = arith.constant 0 : i32
    %c0_i32_0 = arith.constant 0 : i32
    %c0_i32_1 = arith.constant 0 : i32
    return %c0_i32, %c0_i32_0 : i32, i32
  }
  func.func @transform_2(%arg0: i32) -> (i32, i32, i32) {
    %c0_i32 = arith.constant 0 : i32
    %c0_i32_0 = arith.constant 0 : i32
    %c0_i32_1 = arith.constant 0 : i32
    %c0_i32_2 = arith.constant 0 : i32
    return %c0_i32, %c0_i32_0, %c0_i32_1 : i32, i32, i32
  }
  func.func @transform_3(%arg0: i32) -> (i32, i32) {
    %c0_i32 = arith.constant 0 : i32
    %c0_i32_0 = arith.constant 0 : i32
    %c0_i32_1 = arith.constant 0 : i32
    return %c0_i32, %c0_i32_0 : i32, i32
  }
  func.func @transform_4(%arg0: i32) -> (i32, i32) {
    %c0_i32 = arith.constant 0 : i32
    %c0_i32_0 = arith.constant 0 : i32
    return %arg0, %c0_i32 : i32, i32
  }
}

</mosaic_0001>

<bundles_post_ra>
// kernel: tpu_custom_call.1
= control target key start
LH: loop header
LB: loop body
LE: loop exit
PB: predicated region body
PF: predicated region fallthrough
CT: control target
= control target key end

     0   :  { %9 = vsyncpa [#allocation3], 0  ;;  %s1047_s0 = inlined_call_operand.hbm [shape: f32[32,128], index: 0, kind: input, shape index: {}]   ;;  %s1048_s1 = inlined_call_operand.vmem [shape: f32[1,128], index: 1, kind: input, shape index: {}]   ;;  %s1049_s2 = inlined_call_operand.hbm [shape: bf16[3,128,128], index: 2, kind: input, shape index: {}]   ;;  %s1050_s3 = inlined_call_operand.vmem [shape: f32[1,128], index: 3, kind: input, shape index: {}]   ;;  %s1051_s4 = inlined_call_operand.hbm [shape: f32[32,128], index: 4, kind: output, shape index: {}]  }
   0x1   :  { %10 = vsyncpa [#allocation6], 0 }
   0x2   :  { %11 = vsyncpa [#allocation4], 0  ;;  %s907_s15 = smov [#allocation2]   ;;  %s835_s19 = scalar_lea.hbm %s1047_s0, 512 }
   0x3   :  { %s17_s16 = sshll.u32 %s907_s15, 4  ;;  %p836_p0 = scmp.ne.s32.totalorder %s1047_s0, %s835_s19  ;;  %s18_s16 = int_to_ptr.vmem [resolvable:$true] %s17_s16 }
   0x4   :  { %p839_p1 = scmp.lt.u32.totalorder %s835_s19, %s1047_s0 }
   0x6   :  { %p841_p2 = pnand %p839_p1, %p836_p0 }
   0x8   :  { %844 = shalt.err (!%p841_p2)
}
   0x9   :  { %s845_s24 = scalar_lea.vmem %s18_s16, 512  ;;  %p850_p4 = scmp.lt.s32.totalorder %s18_s16, %s18_s16 }
   0xa   :  { %p846_p3 = scmp.ne.s32.totalorder %s18_s16, %s845_s24  ;;  %p851_p5 = scmp.lt.s32.totalorder %s845_s24, %s845_s24 }
   0xc   :  { %p852_p6 = por %p851_p5, %p850_p4 }
   0xe   :  { %p853_p7 = pnand %p852_p6, %p846_p3 }
  0x10   :  { %856 = shalt.err (!%p853_p7)
}
  0x11   :  { %s908_s25 = smov 128   ;;  %s909_s26 = smov 8  }
  0x12   :  { %23 = dma.hbm_to_vmem [thread:$0]  %s1047_s0, 512, %s18_s16, [#allocation3], %s908_s25, %s908_s25, %s909_s26  }
  0x13   :  { %s910_s29 = smov [#allocation5]   ;;  %s857_s7 = scalar_lea.hbm %s1049_s2, 3072 }
  0x14   :  { %s31_s30 = sshll.u32 %s910_s29, 4  ;;  %p858_p8 = scmp.ne.s32.totalorder %s1049_s2, %s857_s7  ;;  %s32_s30 = int_to_ptr.vmem [resolvable:$true] %s31_s30 }
  0x15   :  { %p861_p9 = scmp.lt.u32.totalorder %s857_s7, %s1049_s2 }
  0x17   :  { %p863_p10 = pnand %p861_p9, %p858_p8 }
  0x19   :  { %866 = shalt.err (!%p863_p10)
}
  0x1a   :  { %s867_s12 = scalar_lea.vmem %s32_s30, 3072  ;;  %p872_p12 = scmp.lt.s32.totalorder %s32_s30, %s32_s30 }
  0x1b   :  { %p868_p11 = scmp.ne.s32.totalorder %s32_s30, %s867_s12  ;;  %p873_p13 = scmp.lt.s32.totalorder %s867_s12, %s867_s12 }
  0x1d   :  { %p874_p0 = por %p873_p13, %p872_p12 }
  0x1f   :  { %p875_p1 = pnand %p874_p0, %p868_p11 }
  0x21   :  { %878 = shalt.err (!%p875_p1)
}
  0x22   :  { %s911_s0 = smov 64   ;;  %s912_s13 = smov 4  }
  0x23   :  { %37 = dma.hbm_to_vmem [thread:$0]  %s1049_s2, 3072, %s32_s30, [#allocation6], %s911_s0, %s911_s0, %s912_s13  }
  0x24   :  { %901 = dma.done.wait [#allocation3], 512  }
  0x25   :  { %902 = vsyncadd [#allocation3], 4294966784 }
  0x26   :  { %903 = dma.done.wait [#allocation6], 3072  }
  0x27   :  { %904 = vsyncadd [#allocation6], 4294964224  ;;  %v968_v0 = vld [vmem:[#allocation2 + $0x10] sm:$0xff]  ;;  %v970_v1 = vld [vmem:[#allocation2] sm:$0xff]  ;;  %v107_v25 = vlaneseq  ;;  %vm913_vm1 = vmmov 1   ;;  %v914_v40 = vmov 0  }
  0x28   :  { %v972_v2 = vld [vmem:[#allocation2 + $0x18] sm:$0xff]  ;;  %v55_v3 = vmul.f32 %v968_v0, %v968_v0  ;;  %v53_v4 = vmul.f32 %v970_v1, %v970_v1  ;;  %v978_v5 = vld [vmem:[#allocation2 + $0x8] sm:$0xff]  ;;  %v803_v6 = vld [vmem:[#allocation5] sm:$0xff]   ;;  %vm340_vm10 = vsmask.f32 256  ;;  %vm96_vm12 = vcmask 1040384  }
  0x29   :  { %v56_v7 = vmul.f32 %v972_v2, %v972_v2  ;;  %v54_v8 = vmul.f32 %v978_v5, %v978_v5  ;;  %722 = vmatprep.subr.bf16.mxu1 %v803_v6  ;;  %v804_v9 = vld [vmem:[#allocation5 + $0x8] sm:$0xff]   ;;  %v805_v10 = vld [vmem:[#allocation5 + $0x40] sm:$0xff]   ;;  %v806_v11 = vld [vmem:[#allocation5 + $0x10] sm:$0xff]   ;;  %v108_v26 = vshrl.u32 %v107_v25, 7  ;;  %s915_s18 = smov [#allocation7]  }
  0x2a   :  { %61 = vadd.xlane.f32.xlu1 %v55_v3  ;;  %57 = vadd.xlane.f32.xlu0 %v53_v4  ;;  %v807_v12 = vld [vmem:[#allocation5 + $0x48] sm:$0xff]   ;;  %v808_v13 = vld [vmem:[#allocation5 + $0x18] sm:$0xff]   ;;  %v809_v14 = vld [vmem:[#allocation5 + $0x50] sm:$0xff]   ;;  %s647_s19 = sshll.u32 %s915_s18, 4  ;;  %s648_s19 = int_to_ptr.vmem [resolvable:$true] %s647_s19 }
  0x2b   :  { %723 = vmatpush3.bf16.msra.mxu1 %v803_v6  ;;  %742 = vmatprep.subr.bf16.mxu0 %v805_v10  ;;  %v810_v15 = vld [vmem:[#allocation5 + $0x20] sm:$0xff]   ;;  %v811_v16 = vld [vmem:[#allocation5 + $0x58] sm:$0xff]   ;;  %v812_v17 = vld [vmem:[#allocation5 + $0x28] sm:$0xff]   ;;  %v110_v27 = vadd.s32 16, %v108_v26  ;;  %v116_v29 = vand.u32 15, %v108_v26  ;;  %p884_p3 = scmp.lt.s32.totalorder %s648_s19, %s648_s19 }
  0x2c   :  { %724 = vmatprep.subr.bf16.mxu1 %v804_v9  ;;  %743 = vmatpush3.bf16.msra.mxu0 %v805_v10  ;;  %v813_v18 = vld [vmem:[#allocation5 + $0x60] sm:$0xff]   ;;  %v814_v19 = vld [vmem:[#allocation5 + $0x30] sm:$0xff]   ;;  %v815_v20 = vld [vmem:[#allocation5 + $0x68] sm:$0xff]  }
  0x2d   :  { %744 = vmatprep.subr.bf16.mxu0 %v807_v12  ;;  %v816_v21 = vld [vmem:[#allocation5 + $0x38] sm:$0xff]   ;;  %v817_v22 = vld [vmem:[#allocation5 + $0x70] sm:$0xff]   ;;  %v984_v24 = vld [vmem:[#allocation5 + $0x80] sm:$0xff]   ;;  %v130_v28 = vand.u32 15, %v110_v27  ;;  %vm991_vm3 = vcmp.ge.s32.totalorder %v116_v29, 1  ;;  %vm1001_vm6 = vcmp.ge.s32.totalorder %v116_v29, 2 }
  0x2e   :  { %63 = vadd.xlane.f32.xlu1 %v56_v7  ;;  %59 = vadd.xlane.f32.xlu0 %v54_v8  ;;  %v818_v23 = vld [vmem:[#allocation5 + $0x78] sm:$0xff]   ;;  %vm180_vm2 = vmpackc.low %vm913_vm1, %vm913_vm1  ;;  %v660_v61 = vld [vmem:[%s1048_s1] ss:$0 sm:$0xff]  ;;  %vm379_vm1 = vsmask.f32 7424 }
  0x2f   :  { %725 = vmatpush3.bf16.msra.mxu1 %v804_v9  ;;  %vm987_vm0 = vcmp.ge.s32.totalorder %v130_v28, 1  ;;  %v184_v41 = vsel %vm180_vm2, 65537, %v914_v40  ;;  %vm326_vm5 = vmpackc.low %vm991_vm3, %vm991_vm3  ;;  %vm1005_vm7 = vcmp.ge.s32.totalorder %v130_v28, 2  ;;  %vm521_vm2 = vcmask 1046528  }
  0x30   :  { %726 = vmatprep.subr.bf16.mxu1 %v806_v11  ;;  %745 = vmatpush3.bf16.msra.mxu0 %v807_v12  ;;  %vm328_vm4 = vmpackc.low %vm987_vm0, %vm987_vm0  ;;  %v330_v47 = vsel %vm326_vm5, 65537, %v914_v40 }
  0x31   :  { %746 = vmatprep.subr.bf16.mxu0 %v809_v14  ;;  %v332_v44 = vsel %vm328_vm4, 65537, %v914_v40  ;;  %v674_v49 = vcombine.low %v330_v47, %v184_v41  ;;  %vm179_vm8 = vmpackc.low %vm1001_vm6, %vm1001_vm6  ;;  %v824_v47 = vld [vmem:[#allocation5 + $0xa8] sm:$0xff]  }
  0x32   :  { %v675_v48 = vcombine.low %v332_v44, %v184_v41  ;;  %vm181_vm9 = vmpackc.low %vm1005_vm7, %vm1005_vm7  ;;  %v183_v6 = vsel %vm179_vm8, 65537, %v914_v40  ;;  %v821_v44 = vld [vmem:[#allocation5 + $0x90] sm:$0xff]  }
  0x33   :  { %727 = vmatpush3.bf16.msra.mxu1 %v806_v11  ;;  %v342_v53 = vshrl.u32 %v674_v49, 16  ;;  %v345_v63 = vshll.u32 %v674_v49, 16  ;;  %v185_v9 = vsel %vm181_vm9, 65537, %v914_v40  ;;  %v826_v49 = vld [vmem:[#allocation5 + $0xb8] sm:$0xff]  }
  0x34   :  { %728 = vmatprep.subr.bf16.mxu1 %v808_v13  ;;  %747 = vmatpush3.bf16.msra.mxu0 %v809_v14  ;;  %v349_v50 = vshrl.u32 %v675_v48, 16  ;;  %v352_v57 = vshll.u32 %v675_v48, 16  ;;  %v662_v14 = vcombine.low %v183_v6, %v184_v41  ;;  %v825_v48 = vld [vmem:[#allocation5 + $0xb0] sm:$0xff]  }
  0x35   :  { %748 = vmatprep.subr.bf16.mxu0 %v811_v16  ;;  %v344_v62 = vrot.slane %v342_v53, 7 }
  0x36   :  { %v351_v56 = vrot.slane %v349_v50, 7  ;;  %vm193_vm13 = vcmp.ne.s16.totalorder %v662_v14, 0 }
  0x37   :  { %729 = vmatpush3.bf16.msra.mxu1 %v808_v13 }
  0x38   :  { %730 = vmatprep.subr.bf16.mxu1 %v810_v15  ;;  %749 = vmatpush3.bf16.msra.mxu0 %v811_v16  ;;  %v354_v7 = vor.u32 %v352_v57, %v351_v56  ;;  %vm358_vm11 = vcmp.ne.s16.totalorder %v351_v56, 0 }
  0x39   :  { %750 = vmatprep.subr.bf16.mxu0 %v813_v18 }
  0x3b   :  { %731 = vmatpush3.bf16.msra.mxu1 %v810_v15  ;;  %v347_v15 = vor.u32 %v345_v63, %v344_v62 }
  0x3c   :  { %732 = vmatprep.subr.bf16.mxu1 %v812_v17  ;;  %751 = vmatpush3.bf16.msra.mxu0 %v813_v18  ;;  %v355_v18 = vsel %vm340_vm10, %v344_v62, %v354_v7 }
  0x3d   :  { %752 = vmatprep.subr.bf16.mxu0 %v815_v20  ;;  %vm356_vm14 = vcmp.ne.s16.totalorder %v347_v15, 0  ;;  %vm357_vm15 = vcmp.ne.s16.totalorder %v355_v18, 0 }
  0x3f   :  { %733 = vmatpush3.bf16.msra.mxu1 %v812_v17  ;;  %v663_v17 = vcombine.low %v185_v9, %v184_v41 }
  0x40   :  { %734 = vmatprep.subr.bf16.mxu1 %v814_v19  ;;  %753 = vmatpush3.bf16.msra.mxu0 %v815_v20 }
  0x41   :  { %754 = vmatprep.subr.bf16.mxu0 %v817_v22  ;;  %vm194_vm0 = vcmp.ne.s16.totalorder %v663_v17, 0 }
  0x43   :  { %735 = vmatpush3.bf16.msra.mxu1 %v814_v19 }
  0x44   :  { %736 = vmatprep.subr.bf16.mxu1 %v816_v21  ;;  %755 = vmatpush3.bf16.msra.mxu0 %v817_v22 }
  0x45   :  { %756 = vmatprep.subr.bf16.mxu0 %v818_v23 }
  0x47   :  { %737 = vmatpush3.bf16.msra.mxu1 %v816_v21 }
  0x48   :  { %757 = vmatpush3.bf16.msra.mxu0 %v818_v23 }
  0x49   :  { %762 = vmatprep.subr.bf16.mxu0 %v984_v24 }
  0xb7   :  { %v62_v31 = vpop.xlane.xlu1 %61  ;;  %v58_v32 = vpop.xlane.xlu0 %57 }
  0xb8   :  { %v67_v33 = vmul.f32 0.03125, %v62_v31  ;;  %v65_v34 = vmul.f32 0.03125, %v58_v32 }
  0xba   :  { %v71_v36 = vadd.f32 1e-05, %v67_v33  ;;  %v69_v37 = vadd.f32 1e-05, %v65_v34 }
  0xbb   :  { %v64_v38 = vpop.xlane.xlu1 %63  ;;  %v60_v39 = vpop.xlane.xlu0 %59 }
  0xbc   :  { %827 = vrsqrt.f32 %v71_v36  ;;  %v68_v42 = vmul.f32 0.03125, %v64_v38  ;;  %v66_v43 = vmul.f32 0.03125, %v60_v39 }
  0xbd   :  { %829 = vrsqrt.f32 %v69_v37 }
  0xbe   :  { %v72_v45 = vadd.f32 1e-05, %v68_v42  ;;  %v70_v46 = vadd.f32 1e-05, %v66_v43  ;;  %v820_v42 = vld [vmem:[#allocation5 + $0x88] sm:$0xff]  }
  0xc0   :  { %831 = vrsqrt.f32 %v72_v45  ;;  %v822_v45 = vld [vmem:[#allocation5 + $0x98] sm:$0xff]  }
  0xc1   :  { %833 = vrsqrt.f32 %v70_v46  ;;  %v823_v46 = vld [vmem:[#allocation5 + $0xa0] sm:$0xff]  }
  0xc6   :  { %v828_v52 = vpop.eup %827 }
  0xc7   :  { %v830_v55 = vpop.eup %829  ;;  %v79_v58 = vmul.f32 %v828_v52, %v968_v0 }
  0xc8   :  { %v77_v60 = vmul.f32 %v830_v55, %v970_v1  ;;  %v661_v55 = vld [vmem:[%s1050_s3] ss:$0 sm:$0xff]  ;;  %s879_s3 = scalar_lea.vmem %s648_s19, 512 }
  0xc9   :  { %v90_v10 = vmul.f32 %v660_v61, %v79_v58  ;;  %p880_p2 = scmp.ne.s32.totalorder %s648_s19, %s879_s3  ;;  %p885_p4 = scmp.lt.s32.totalorder %s879_s3, %s879_s3 }
  0xca   :  { %v832_v59 = vpop.eup %831  ;;  %v88_v12 = vmul.f32 %v660_v61, %v77_v60 }
  0xcb   :  { %v834_v3 = vpop.eup %833  ;;  %v80_v4 = vmul.f32 %v832_v59, %v972_v2  ;;  %p886_p5 = por %p885_p4, %p884_p3 }
  0xcc   :  { %v78_v8 = vmul.f32 %v834_v3, %v978_v5 }
  0xcd   :  { %v91_v11 = vmul.f32 %v660_v61, %v80_v4  ;;  %p887_p6 = pnand %p886_p5, %p880_p2 }
  0xce   :  { %v89_v13 = vmul.f32 %v660_v61, %v78_v8 }
  0xcf   :  { %v93_v16 = vpack.c.bf16 %v91_v11, %v90_v10 }
  0xd0   :  { %v92_v19 = vpack.c.bf16 %v89_v13, %v88_v12 }
  0xd1   :  { %v98_v20 = vrot.slane %v93_v16, 7 }
  0xd2   :  { %v97_v21 = vrot.slane %v92_v19, 7 }
  0xd3   :  { %v361_v22 = vsel %vm358_vm11, %v98_v20, 0 }
  0xd4   :  { %v105_v23 = vsel %vm96_vm12, 0, %v97_v21  ;;  %v99_v25 = vsel %vm96_vm12, %v97_v21, %v98_v20  ;;  %v396_v30 = vshll.u32 %v361_v22, 16 }
  0xd5   :  { %738 = vmatprep.mubr.msk.bf16.mxu1 %vm193_vm13, %v105_v23  ;;  %v359_v26 = vsel %vm356_vm14, %v105_v23, 0  ;;  %v360_v27 = vsel %vm357_vm15, %v99_v25, 0  ;;  %v522_v35 = vrot.slane %v105_v23, 1  ;;  %v523_v36 = vrot.slane %v99_v25, 1 }
  0xd6   :  { %v383_v28 = vshll.u32 %v359_v26, 16  ;;  %739 = vmatmul.mubr.msk.bf16.vlgmr.msra.gmra.mrb[0].mxu1 %vm194_vm0, %v99_v25  ;;  %v388_v29 = vshll.u32 %v360_v27, 16  ;;  %v381_v31 = vshrl.u32 %v359_v26, 16  ;;  %v392_v34 = vshrl.u32 %v360_v27, 16 }
  0xd7   :  { %v398_v39 = vrot.slane %v396_v30, 1  ;;  %v524_v43 = vsel %vm521_vm2, %v522_v35, %v523_v36 }
  0xd8   :  { %v385_v32 = vrot.slane %v383_v28, 1  ;;  %v390_v33 = vrot.slane %v388_v29, 1 }
  0xda   :  { %v386_v37 = vor.u32 %v385_v32, %v381_v31  ;;  %v394_v38 = vor.u32 %v392_v34, %v390_v33 }
  0xdc   :  { %v391_v40 = vsel %vm379_vm1, %v386_v37, %v390_v33  ;;  %v399_v41 = vsel %vm379_vm1, %v394_v38, %v398_v39 }
  0xdd   :  { %758 = vmatprep.mubr.bf16.mxu0 %v391_v40 }
  0xde   :  { %759 = vmatmul.mubr.bf16.vlgmr.msra.gmra.mrb[0].mxu0 %v399_v41 }
  0xdf   :  { %763 = vmatpush3.bf16.msra.mxu0 %v984_v24  ;;  %778 = vmatprep.mubr.bf16.mxu0 %v524_v43  ;;  %v525_v24 = vrot.slane %v98_v20, 1 }
  0xe0   :  { %764 = vmatprep.subr.bf16.mxu0 %v820_v42 }
  0xe1   :  { %v526_v50 = vsel %vm521_vm2, %v523_v36, %v525_v24 }
  0xe3   :  { %765 = vmatpush3.bf16.msra.mxu0 %v820_v42 }
  0xe4   :  { %766 = vmatprep.subr.bf16.mxu0 %v821_v44 }
  0xe7   :  { %767 = vmatpush3.bf16.msra.mxu0 %v821_v44 }
  0xe8   :  { %768 = vmatprep.subr.bf16.mxu0 %v822_v45 }
  0xeb   :  { %769 = vmatpush3.bf16.msra.mxu0 %v822_v45 }
  0xec   :  { %770 = vmatprep.subr.bf16.mxu0 %v823_v46 }
  0xef   :  { %771 = vmatpush3.bf16.msra.mxu0 %v823_v46 }
  0xf0   :  { %772 = vmatprep.subr.bf16.mxu0 %v824_v47 }
  0xf3   :  { %773 = vmatpush3.bf16.msra.mxu0 %v824_v47 }
  0xf4   :  { %774 = vmatprep.subr.bf16.mxu0 %v825_v48 }
  0xf7   :  { %775 = vmatpush3.bf16.msra.mxu0 %v825_v48 }
  0xf8   :  { %776 = vmatprep.subr.bf16.mxu0 %v826_v49 }
  0xfb   :  { %777 = vmatpush3.bf16.msra.mxu0 %v826_v49 }
  0xfe   :  { %779 = vmatmul.mubr.bf16.vlgmr.msra.gmra.mrb[0].mxu0 %v526_v50 }
 0x1a9   :  { %v740_v51 = vpop.f32.mrb[0].mxu1 }
 0x1aa   :  { %v295_v52 = vpop.f32.mrb[1].mxu1  ;;  %v312_v56 = vadd.f32 %v740_v51, %v661_v55 }
 0x1ab   :  { %v741_v53 = vpop.f32.mrb[2].mxu1  ;;  %v310_v57 = vadd.f32 %v661_v55, %v295_v52 }
 0x1ac   :  { %v298_v54 = vpop.f32.mrb[3].mxu1  ;;  %v313_v59 = vadd.f32 %v741_v53, %v661_v55 }
 0x1ad   :  { %v311_v62 = vadd.f32 %v661_v55, %v298_v54 }
 0x1d1   :  { %v780_v58 = vpop.f32.mrb[0].mxu0 }
 0x1d2   :  { %v783_v60 = vadd.f32 %v780_v58, %v312_v56  ;;  %v611_v61 = vpop.f32.mrb[1].mxu0 }
 0x1d3   :  { %v785_v63 = vadd.f32 %v611_v61, %v310_v57  ;;  %v781_v3 = vpop.f32.mrb[2].mxu0 }
 0x1d4   :  { %v632_v4 = vmax.f32 %v783_v60, 0.0  ;;  %v787_v6 = vadd.f32 %v781_v3, %v313_v59  ;;  %v614_v7 = vpop.f32.mrb[3].mxu0 }
 0x1d5   :  { %v630_v8 = vmax.f32 %v785_v63, 0.0  ;;  %v789_v9 = vadd.f32 %v614_v7, %v311_v62 }
 0x1d6   :  { %v636_v10 = vadd.f32 %v632_v4, %v968_v0  ;;  %v633_v11 = vmax.f32 %v787_v6, 0.0 }
 0x1d7   :  { %v634_v12 = vadd.f32 %v630_v8, %v970_v1  ;;  %v631_v13 = vmax.f32 %v789_v9, 0.0 }
 0x1d8   :  { %640 = vst [vmem:[#allocation7 + $0x10] sm:$0xff] %v636_v10  ;;  %v637_v14 = vadd.f32 %v633_v11, %v972_v2 }
 0x1d9   :  { %638 = vst [vmem:[#allocation7] sm:$0xff] %v634_v12  ;;  %v635_v15 = vadd.f32 %v631_v13, %v978_v5 }
 0x1da   :  { %641 = vst [vmem:[#allocation7 + $0x18] sm:$0xff] %v637_v14 }
 0x1db   :  { %639 = vst [vmem:[#allocation7 + $0x8] sm:$0xff] %v635_v15 }
 0x1dc   :  { %890 = shalt.err (!%p887_p6)
}
 0x1dd   :  { %s891_s22 = scalar_lea.hbm %s1051_s4, 512 }
 0x1de   :  { %p892_p7 = scmp.ne.s32.totalorder %s1051_s4, %s891_s22  ;;  %p895_p8 = scmp.lt.u32.totalorder %s891_s22, %s1051_s4 }
 0x1e0   :  { %p897_p9 = pnand %p895_p8, %p892_p7 }
 0x1e2   :  { %900 = shalt.err (!%p897_p9)
}
 0x1e3   :  { %653 = dma.vmem_to_hbm [thread:$0]  %s648_s19, 512, %s1051_s4, [#allocation4], %s908_s25, %s908_s25, %s909_s26  }
 0x1e4   :  { %905 = dma.done.wait [#allocation4], 512  }
 0x1e5   :  { %906 = vsyncadd [#allocation4], 4294966784 }
 0x1e6   :  { %657 = vsyncpa [#allocation3], 1 }
 0x1e7   :  { %658 = vsyncpa [#allocation6], 1 }
 0x1e8   :  { %659 = vsyncpa [#allocation4], 1 }

</bundles_post_ra>
